<compile_context>
chip_gen: v6e
topology: v6e:2x2x1
jax: 0.10.0
libtpu: 0.0.40
codegen_flags: <defaults>
</compile_context>

<pallas_src>
import functools

import jax
import jax.numpy as jnp
from jax import lax
from jax.experimental import pallas as pl
from jax.experimental.pallas import tpu as pltpu


def _cdiv(a, b):
    return -(-a // b)


def _flatten_nchw(x):
    b, c, h, w = x.shape
    return x.reshape(b * c, h * w)


@functools.lru_cache(maxsize=1)
def _vmem_limit_bytes():
    """~75% of physical VMEM (gen-aware); conservative fallback if unknown."""
    try:
        return int(pltpu.get_tpu_info().vmem_capacity_bytes) * 3 // 4
    except Exception:
        return 48 * 1024 * 1024


def _choose_cols_per_block(rows_per_block, m, itemsize, budget_bytes):
    """Columns per streamed K block: full extent if it fits the budget,
    otherwise the largest multiple of 128 that does (floor 128)."""
    if rows_per_block * m * itemsize <= budget_bytes:
        return m
    tk = budget_bytes // max(1, rows_per_block * itemsize)
    tk = max(128, (tk // 128) * 128)
    return min(tk, m)


# ----------------------------------------------------------------------------
# Kernel 1: per-row-tile partial sum of squared differences (for MSE).
# Fully parallel grid: each tile writes its own partial; summed in JAX.
# ----------------------------------------------------------------------------
def _sqdiff_partial_kernel(a_ref, b_ref, o_ref, *, rows, tr):
    d = a_ref[...].astype(jnp.float32) - b_ref[...].astype(jnp.float32)
    if rows % tr != 0:
        # Last row tile is ragged: mask out-of-range rows (no host-side pad).
        i = pl.program_id(0)
        rr = lax.broadcasted_iota(jnp.int32, d.shape, 0)
        d = jnp.where(i * tr + rr < rows, d, 0.0)
    o_ref[0, 0] = jnp.sum(d * d)


def mse_mean(a_2d, b_2d, *, block_rows=None):
    """mean((a - b)**2) over all elements; per-tile partials reduced in JAX."""
    rows, cols = a_2d.shape
    itemsize = a_2d.dtype.itemsize
    n_elems = rows * cols
    vmem = _vmem_limit_bytes()

    # 2 streamed inputs, double-buffered -> 4 live blocks; leave headroom.
    per_block = min(8 << 20, max(1 << 20, vmem // 8))
    if block_rows is not None:
        tr = block_rows                      # must be a multiple of 8 (< rows)
    elif rows * cols * itemsize <= per_block or rows <= 8:
        tr = rows                            # single full-extent block
    else:
        tr = max(8, min(rows, per_block // (cols * itemsize)) // 8 * 8)

    num_tiles = _cdiv(rows, tr)
    kernel = functools.partial(_sqdiff_partial_kernel, rows=rows, tr=tr)

    partials = pl.pallas_call(
        kernel,
        out_shape=jax.ShapeDtypeStruct((num_tiles, 1), jnp.float32),
        grid=(num_tiles,),
        in_specs=[
            pl.BlockSpec((tr, cols), lambda i: (i, 0)),
            pl.BlockSpec((tr, cols), lambda i: (i, 0)),
        ],
        out_specs=pl.BlockSpec((1, 1), lambda i: (i, 0),
                               memory_space=pltpu.MemorySpace.SMEM),
        compiler_params=pltpu.CompilerParams(
            dimension_semantics=("parallel",),   # megacore may split tiles
            vmem_limit_bytes=vmem,
        ),
    )(a_2d, b_2d)
    return jnp.sum(partials) / float(n_elems)


# ----------------------------------------------------------------------------
# Kernel 2a: fused gram + MSE, small N: single (N, N) accumulator pair,
# 1-D K grid, ragged last K tile masked in-kernel on the last step only.
# kernel output = sum(((Gl_raw - Gp_raw) / (N*M))^2); final 1/N^2 outside.
# ----------------------------------------------------------------------------
def _gram_mse_kernel(xl_ref, xp_ref, o_ref, gl_acc, gp_acc, *,
                     m, tk, gram_norm, compute_dtype):
    k = pl.program_id(0)
    nk = _cdiv(m, tk)
    rem = m % tk

    @pl.when(k == 0)
    def _():
        gl_acc[...] = jnp.zeros_like(gl_acc)
        gp_acc[...] = jnp.zeros_like(gp_acc)

    # Contract both operands on their last (lane) axis: F @ F.T without any
    # transpose; operands feed the MXU at compute_dtype with f32 accumulation.
    # TODO(synk): verify with pl.lower_as_mlir that this contraction does not
    # emit a per-tile vxpose; if it ever does, switch to pl.dot(trans_b=True).
    dims = (((1,), (1,)), ((), ()))

    def _accumulate(xl, xp):
        xl = xl.astype(compute_dtype)
        xp = xp.astype(compute_dtype)
        gl_acc[...] += lax.dot_general(xl, xl, dims,
                                       preferred_element_type=jnp.float32)
        gp_acc[...] += lax.dot_general(xp, xp, dims,
                                       preferred_element_type=jnp.float32)

    if rem == 0:
        _accumulate(xl_ref[...], xp_ref[...])
    else:
        @pl.when(k < nk - 1)
        def _():
            _accumulate(xl_ref[...], xp_ref[...])

        @pl.when(k == nk - 1)
        def _():
            # Ragged last K tile: zero the out-of-range columns (zero columns
            # contribute nothing to F @ F.T).
            col = lax.broadcasted_iota(jnp.int32, xl_ref.shape, 1)
            mask = col < rem
            _accumulate(jnp.where(mask, xl_ref[...], 0),
                        jnp.where(mask, xp_ref[...], 0))

    @pl.when(k == nk - 1)
    def _():
        d = (gl_acc[...] - gp_acc[...]) * gram_norm   # fold 1/(N*M) here
        o_ref[0, 0] = jnp.sum(d * d)


# ----------------------------------------------------------------------------
# Kernel 2b: fused gram + MSE, large N: output-tiled (i, j, k) grid.
# Per-(i,j) tile (tn, tn) accumulators; only upper-triangular tiles computed
# (gram is symmetric); ragged rows/cols masked in-kernel; per-tile partial
# losses written to an (ni, ni) SMEM output and weight-summed in JAX.
# ----------------------------------------------------------------------------
def _gram_mse_tiled_kernel(xl_i_ref, xl_j_ref, xp_i_ref, xp_j_ref, o_ref,
                           gl_acc, gp_acc, *, n, m, tn, tk, gram_norm,
                           compute_dtype):
    i = pl.program_id(0)
    j = pl.program_id(1)
    k = pl.program_id(2)
    nk = _cdiv(m, tk)
    rem_cols = m % tk

    @pl.when(k == 0)
    def _():
        gl_acc[...] = jnp.zeros_like(gl_acc)
        gp_acc[...] = jnp.zeros_like(gp_acc)
        # Lower-triangle tiles are skipped: keep their output defined (zero).
        o_ref[0, 0] = jnp.float32(0.0)

    @pl.when(j >= i)   # symmetric gram: compute upper triangle only
    def _():
        def _load(ref):
            x = ref[...]
            if rem_cols != 0:
                col = lax.broadcasted_iota(jnp.int32, x.shape, 1)
                x = jnp.where(k * tk + col < m, x, 0)
            return x.astype(compute_dtype)

        dims = (((1,), (1,)), ((), ()))
        gl_acc[...] += lax.dot_general(_load(xl_i_ref), _load(xl_j_ref), dims,
                                       preferred_element_type=jnp.float32)
        gp_acc[...] += lax.dot_general(_load(xp_i_ref), _load(xp_j_ref), dims,
                                       preferred_element_type=jnp.float32)

        @pl.when(k == nk - 1)
        def _():
            d = (gl_acc[...] - gp_acc[...]) * gram_norm
            if n % tn != 0:
                # Ragged row tiles: mask invalid gram rows/cols of this tile.
                rr = lax.broadcasted_iota(jnp.int32, d.shape, 0)
                cc = lax.broadcasted_iota(jnp.int32, d.shape, 1)
                valid = (i * tn + rr < n) & (j * tn + cc < n)
                d = jnp.where(valid, d, 0.0)
            o_ref[0, 0] = jnp.sum(d * d)


def gram_mse(x_label_2d, x_pred_2d, *, block_rows=None, block_cols=None,
             matmul_dtype=None):
    """mean((gram(label) - gram(pred))**2) with gram = F F^T / (N*M)."""
    n, m = x_label_2d.shape
    assert x_pred_2d.shape == (n, m)
    in_dtype = x_label_2d.dtype
    itemsize = in_dtype.itemsize

    # Explicit operand-dtype policy (addresses the precision concern):
    # bf16 inputs (or matmul_dtype=bf16) run the MXU at native bf16 rate with
    # f32 accumulation; f32 inputs stay f32 (multi-pass MXU, no truncation).
    if matmul_dtype is not None:
        compute_dtype = jnp.dtype(matmul_dtype)
    elif in_dtype == jnp.bfloat16:
        compute_dtype = jnp.bfloat16
    else:
        compute_dtype = jnp.float32

    vmem = _vmem_limit_bytes()
    gram_norm = 1.0 / float(n * m)

    use_tiled = ((block_rows is not None and block_rows < n)
                 or (block_rows is None and n > 512))

    if not use_tiled:
        # --- Small-N (HBM-bound) path: single (N, N) accumulators ----------
        acc_bytes = 2 * 4 * n * n
        per_block = min(8 << 20, max(1 << 20, (vmem - acc_bytes) // 8))
        tk = (block_cols if block_cols is not None
              else _choose_cols_per_block(n, m, itemsize, per_block))
        tk = m if tk >= m else tk
        kt = _cdiv(m, tk)

        kernel = functools.partial(_gram_mse_kernel, m=m, tk=tk,
                                   gram_norm=gram_norm,
                                   compute_dtype=compute_dtype)
        ssq = pl.pallas_call(
            kernel,
            out_shape=jax.ShapeDtypeStruct((1, 1), jnp.float32),
            grid=(kt,),
            in_specs=[
                pl.BlockSpec((n, tk), lambda k: (0, k)),
                pl.BlockSpec((n, tk), lambda k: (0, k)),
            ],
            out_specs=pl.BlockSpec((1, 1), lambda k: (0, 0),
                                   memory_space=pltpu.MemorySpace.SMEM),
            scratch_shapes=[
                pltpu.VMEM((n, n), jnp.float32),
                pltpu.VMEM((n, n), jnp.float32),
            ],
            compiler_params=pltpu.CompilerParams(
                dimension_semantics=("arbitrary",),
                vmem_limit_bytes=vmem,
            ),
        )(x_label_2d, x_pred_2d)
        return ssq[0, 0] / float(n * n)

    # --- Large-N (compute-bound) path: output-tiled (i, j, k) grid ---------
    tn = block_rows if block_rows is not None else 512
    tn = max(8, (min(tn, n) // 8) * 8)           # multiple of 8
    ni = _cdiv(n, tn)
    acc_bytes = 2 * 4 * tn * tn
    # 4 streamed (tn, tk) blocks, double-buffered -> 8 live blocks.
    per_block = min(4 << 20, max(512 << 10, (vmem - acc_bytes) // 16))
    tk = (block_cols if block_cols is not None
          else _choose_cols_per_block(tn, m, itemsize, per_block))
    tk = m if tk >= m else tk
    kt = _cdiv(m, tk)

    kernel = functools.partial(_gram_mse_tiled_kernel, n=n, m=m, tn=tn, tk=tk,
                               gram_norm=gram_norm,
                               compute_dtype=compute_dtype)
    partials = pl.pallas_call(
        kernel,
        out_shape=jax.ShapeDtypeStruct((ni, ni), jnp.float32),
        grid=(ni, ni, kt),
        in_specs=[
            pl.BlockSpec((tn, tk), lambda i, j, k: (i, k)),   # label, rows i
            pl.BlockSpec((tn, tk), lambda i, j, k: (j, k)),   # label, rows j
            pl.BlockSpec((tn, tk), lambda i, j, k: (i, k)),   # pred,  rows i
            pl.BlockSpec((tn, tk), lambda i, j, k: (j, k)),   # pred,  rows j
        ],
        out_specs=pl.BlockSpec((1, 1), lambda i, j, k: (i, j),
                               memory_space=pltpu.MemorySpace.SMEM),
        scratch_shapes=[
            pltpu.VMEM((tn, tn), jnp.float32),
            pltpu.VMEM((tn, tn), jnp.float32),
        ],
        compiler_params=pltpu.CompilerParams(
            # (i, j) parallel -> both v7x TensorCores get gram tiles.
            dimension_semantics=("parallel", "parallel", "arbitrary"),
            vmem_limit_bytes=vmem,
        ),
    )(x_label_2d, x_label_2d, x_pred_2d, x_pred_2d)

    # Symmetric gram: diagonal tiles once, strict upper tiles x2, lower = 0.
    ii = jnp.arange(ni)[:, None]
    jj = jnp.arange(ni)[None, :]
    w = jnp.where(jj > ii, 2.0, jnp.where(jj == ii, 1.0, 0.0)).astype(jnp.float32)
    return jnp.sum(partials * w) / float(n * n)


# ----------------------------------------------------------------------------
# NST_loss equivalent
# ----------------------------------------------------------------------------
class NSTLossPallas:
    def __init__(self, content_loss_weight, style_loss_weight,
                 style_loss_layer_weight):
        self.content_loss_weight = float(content_loss_weight)
        self.style_loss_weight = float(style_loss_weight)
        self.style_loss_layer_weight = float(style_loss_layer_weight)
        # Jit the whole forward; logging happens via jax.debug.print so there
        # is no per-iteration device->host sync (perf review item).
        self._compute = jax.jit(self._forward)

    def _forward(self, content_image_label, content_image_prediction,
                 style_image_labels, style_image_predictions, iter_idx):
        content_loss = mse_mean(
            _flatten_nchw(content_image_label),
            _flatten_nchw(content_image_prediction),
        )
        style_loss = jnp.float32(0.0)
        for sl, sp in zip(style_image_labels, style_image_predictions):
            layer_loss = gram_mse(_flatten_nchw(sl), _flatten_nchw(sp))
            style_loss = style_loss + self.style_loss_layer_weight * layer_loss
        total_loss = (self.content_loss_weight * content_loss
                      + self.style_loss_weight * style_loss)
        jax.debug.print("iteration:{} style_loss = {}", iter_idx, style_loss)
        jax.debug.print("iteration:{} content loss = {} style_loss = {} \n",
                        iter_idx,
                        self.content_loss_weight * content_loss,
                        self.style_loss_weight * style_loss)
        return total_loss

    def __call__(self, content_image_label, content_image_prediction,
                 style_image_labels, style_image_predictions, iteration):
        total_loss = self._compute(
            content_image_label, content_image_prediction,
            tuple(style_image_labels), tuple(style_image_predictions),
            jnp.int32(iteration[0]))
        iteration[0] += 1          # host-side mutable counter, as in PyTorch
        return total_loss


if __name__ == "__main__":
    key = jax.random.PRNGKey(0)
    ks = jax.random.split(key, 12)

    # Content features (NCHW, like the PyTorch module's conv-feature inputs).
    content_label = jax.random.normal(ks[0], (2, 4, 16, 16), jnp.float32)
    content_pred = jax.random.normal(ks[1], (2, 4, 16, 16), jnp.float32)

    # Two style layers with different feature shapes.
    style_labels = [
        jax.random.normal(ks[2], (2, 4, 16, 16), jnp.float32),
        jax.random.normal(ks[3], (2, 8, 8, 8), jnp.float32),
    ]
    style_preds = [
        jax.random.normal(ks[4], (2, 4, 16, 16), jnp.float32),
        jax.random.normal(ks[5], (2, 8, 8, 8), jnp.float32),
    ]

    loss_fn = NSTLossPallas(content_loss_weight=1.0,
                            style_loss_weight=100.0,
                            style_loss_layer_weight=0.2)

    iteration = [0]
    total = loss_fn(content_label, content_pred, style_labels, style_preds,
                    iteration)
    total = jax.block_until_ready(total)

    # --- Pure-JAX references for the same math ------------------------------
    def ref_gram(x):
        b, c, h, w = x.shape
        f = x.reshape(b * c, h * w)
        return (f @ f.T) / (b * c * h * w)

    def ref_gram2d(f):
        return (f @ f.T) / (f.shape[0] * f.shape[1])

    ref_content = jnp.mean((content_label - content_pred) ** 2)
    ref_style = 0.0
    for sl, sp in zip(style_labels, style_preds):
        ref_style = ref_style + 0.2 * jnp.mean((ref_gram(sl) - ref_gram(sp)) ** 2)
    ref_total = 1.0 * ref_content + 100.0 * ref_style

    assert jnp.allclose(total, ref_total, rtol=1e-5, atol=1e-6), (total, ref_total)
    assert iteration[0] == 1

    # --- Extra checks exercising the tiled / masked paths -------------------
    # 1) Small-N path with K tiling and a ragged last K tile (M=300).
    a1 = jax.random.normal(ks[6], (8, 300), jnp.float32)
    b1 = jax.random.normal(ks[7], (8, 300), jnp.float32)
    g1 = gram_mse(a1, b1, block_cols=128)
    g1_ref = jnp.mean((ref_gram2d(a1) - ref_gram2d(b1)) ** 2)
    assert jnp.allclose(g1, g1_ref, rtol=1e-5, atol=1e-6), (g1, g1_ref)

    # 2) Output-tiled (i,j,k) path: ragged rows AND cols + triangular skip.
    a2 = jax.random.normal(ks[8], (20, 300), jnp.float32)
    b2 = jax.random.normal(ks[9], (20, 300), jnp.float32)
    g2 = gram_mse(a2, b2, block_rows=8, block_cols=128)
    g2_ref = jnp.mean((ref_gram2d(a2) - ref_gram2d(b2)) ** 2)
    assert jnp.allclose(g2, g2_ref, rtol=1e-5, atol=1e-6), (g2, g2_ref)

    # 3) Row-tiled MSE with a ragged last row tile (20 rows, tr=8 -> 3 tiles).
    a3 = jax.random.normal(ks[10], (20, 256), jnp.float32)
    b3 = jax.random.normal(ks[11], (20, 256), jnp.float32)
    m3 = mse_mean(a3, b3, block_rows=8)
    m3_ref = jnp.mean((a3 - b3) ** 2)
    assert jnp.allclose(m3, m3_ref, rtol=1e-5, atol=1e-6), (m3, m3_ref)

    # 4) Optional bf16 operands (halves HBM bytes / native MXU rate); compare
    #    against a bf16-operand f32-accumulation reference, loose tolerance.
    g4 = gram_mse(a1, b1, matmul_dtype=jnp.bfloat16)
    fa = a1.astype(jnp.bfloat16).astype(jnp.float32)
    fb = b1.astype(jnp.bfloat16).astype(jnp.float32)
    g4_ref = jnp.mean(((fa @ fa.T) / a1.size - (fb @ fb.T) / b1.size) ** 2)
    assert jnp.allclose(g4, g4_ref, rtol=2e-2, atol=1e-6), (g4, g4_ref)

    jax.block_until_ready((g1, g2, m3, g4))
    print("KERNEL_OK")
</pallas_src>

<mosaic_0001>
module attributes {stable_mosaic.version = 11 : i64} {
  func.func @_gram_mse_kernel(%arg0: i32, %arg1: memref<8x256xf32, #tpu.memory_space<vmem>>, %arg2: memref<8x256xf32, #tpu.memory_space<vmem>>, %arg3: memref<1x1xf32, #tpu.memory_space<smem>>, %arg4: memref<8x8xf32, #tpu.memory_space<vmem>>, %arg5: memref<8x8xf32, #tpu.memory_space<vmem>>) attributes {dimension_semantics = [#tpu.dimension_semantics<arbitrary>], iteration_bounds = array<i64: 1>, scalar_prefetch = 0 : i64, scratch_operands = 2 : i64, tpu.core_type = #tpu.core_type<tc>, window_params = [{transform_indices = @transform_0, window_bounds = array<i64: 8, 256>}, {transform_indices = @transform_1, window_bounds = array<i64: 8, 256>}, {transform_indices = @transform_2, window_bounds = array<i64: 1, 1>}]} {
    %c0_i32 = arith.constant 0 : i32
    %0 = arith.cmpi eq, %arg0, %c0_i32 : i32
    %1 = arith.extui %0 : i1 to i32
    %c0_i32_0 = arith.constant 0 : i32
    %2 = arith.cmpi ne, %1, %c0_i32_0 : i32
    scf.if %2 {
      %cst_15 = arith.constant 0.000000e+00 : f32
      %16 = vector.broadcast %cst_15 : f32 to vector<8x8xf32>
      %c0_16 = arith.constant 0 : index
      %c0_17 = arith.constant 0 : index
      %17 = vector.load %arg4[%c0_16, %c0_17] : memref<8x8xf32, #tpu.memory_space<vmem>>, vector<8x8xf32>
      tpu.vector_store %arg4[%c0_16, %c0_17], %16 {strides = array<i32>} : memref<8x8xf32, #tpu.memory_space<vmem>>, vector<8x8xf32>,
      %cst_18 = arith.constant 0.000000e+00 : f32
      %18 = vector.broadcast %cst_18 : f32 to vector<8x8xf32>
      %c0_19 = arith.constant 0 : index
      %c0_20 = arith.constant 0 : index
      %19 = vector.load %arg5[%c0_19, %c0_20] : memref<8x8xf32, #tpu.memory_space<vmem>>, vector<8x8xf32>
      tpu.vector_store %arg5[%c0_19, %c0_20], %18 {strides = array<i32>} : memref<8x8xf32, #tpu.memory_space<vmem>>, vector<8x8xf32>,
    } else {
    }
    %c0 = arith.constant 0 : index
    %c0_1 = arith.constant 0 : index
    %3 = vector.load %arg1[%c0, %c0_1] : memref<8x256xf32, #tpu.memory_space<vmem>>, vector<8x256xf32>
    %c0_2 = arith.constant 0 : index
    %c0_3 = arith.constant 0 : index
    %4 = vector.load %arg2[%c0_2, %c0_3] : memref<8x256xf32, #tpu.memory_space<vmem>>, vector<8x256xf32>
    %c0_4 = arith.constant 0 : index
    %c0_5 = arith.constant 0 : index
    %5 = vector.load %arg4[%c0_4, %c0_5] : memref<8x8xf32, #tpu.memory_space<vmem>>, vector<8x8xf32>
    %cst = arith.constant dense<0.000000e+00> : vector<8x8xf32>
    %6 = tpu.matmul %3, %3, %cst {dimension_numbers = #tpu.dot_dimension_numbers<[1], [1], [0], [0], [0, 0, 1, 0], [], []>} : vector<8x256xf32>, vector<8x256xf32>, vector<8x8xf32> -> vector<8x8xf32>
    %7 = arith.addf %5, %6 : vector<8x8xf32>
    %c0_6 = arith.constant 0 : index
    %c0_7 = arith.constant 0 : index
    %8 = vector.load %arg4[%c0_6, %c0_7] : memref<8x8xf32, #tpu.memory_space<vmem>>, vector<8x8xf32>
    tpu.vector_store %arg4[%c0_6, %c0_7], %7 {strides = array<i32>} : memref<8x8xf32, #tpu.memory_space<vmem>>, vector<8x8xf32>,
    %c0_8 = arith.constant 0 : index
    %c0_9 = arith.constant 0 : index
    %9 = vector.load %arg5[%c0_8, %c0_9] : memref<8x8xf32, #tpu.memory_space<vmem>>, vector<8x8xf32>
    %cst_10 = arith.constant dense<0.000000e+00> : vector<8x8xf32>
    %10 = tpu.matmul %4, %4, %cst_10 {dimension_numbers = #tpu.dot_dimension_numbers<[1], [1], [0], [0], [0, 0, 1, 0], [], []>} : vector<8x256xf32>, vector<8x256xf32>, vector<8x8xf32> -> vector<8x8xf32>
    %11 = arith.addf %9, %10 : vector<8x8xf32>
    %c0_11 = arith.constant 0 : index
    %c0_12 = arith.constant 0 : index
    %12 = vector.load %arg5[%c0_11, %c0_12] : memref<8x8xf32, #tpu.memory_space<vmem>>, vector<8x8xf32>
    tpu.vector_store %arg5[%c0_11, %c0_12], %11 {strides = array<i32>} : memref<8x8xf32, #tpu.memory_space<vmem>>, vector<8x8xf32>,
    %c0_i32_13 = arith.constant 0 : i32
    %13 = arith.cmpi eq, %arg0, %c0_i32_13 : i32
    %14 = arith.extui %13 : i1 to i32
    %c0_i32_14 = arith.constant 0 : i32
    %15 = arith.cmpi ne, %14, %c0_i32_14 : i32
    scf.if %15 {
      %c0_15 = arith.constant 0 : index
      %c0_16 = arith.constant 0 : index
      %16 = vector.load %arg4[%c0_15, %c0_16] : memref<8x8xf32, #tpu.memory_space<vmem>>, vector<8x8xf32>
      %c0_17 = arith.constant 0 : index
      %c0_18 = arith.constant 0 : index
      %17 = vector.load %arg5[%c0_17, %c0_18] : memref<8x8xf32, #tpu.memory_space<vmem>>, vector<8x8xf32>
      %18 = arith.subf %16, %17 : vector<8x8xf32>
      %cst_19 = arith.constant 4.8828125E-4 : f32
      %19 = vector.broadcast %cst_19 : f32 to vector<8x8xf32>
      %20 = arith.mulf %18, %19 : vector<8x8xf32>
      %21 = arith.mulf %20, %20 : vector<8x8xf32>
      %22 = vector.shape_cast %21 : vector<8x8xf32> to vector<1x8x8xf32>
      %cst_20 = arith.constant dense<0.000000e+00> : vector<1xf32>
      %23 = vector.multi_reduction <add>, %22, %cst_20 [1, 2] : vector<1x8x8xf32> to vector<1xf32>
      %24 = vector.shape_cast %23 : vector<1xf32> to vector<1x1x1xf32>
      %25 = vector.extract %24[0, 0, 0] : f32 from vector<1x1x1xf32>
      %c0_21 = arith.constant 0 : index
      %c0_22 = arith.constant 0 : index
      %26 = memref.load %arg3[%c0_21, %c0_22] : memref<1x1xf32, #tpu.memory_space<smem>>
      memref.store %25, %arg3[%c0_21, %c0_22] : memref<1x1xf32, #tpu.memory_space<smem>>
    } else {
    }
    return
  }
  func.func @transform_0(%arg0: i32) -> (i32, i32) {
    %c0_i32 = arith.constant 0 : i32
    %c0_i32_0 = arith.constant 0 : i32
    return %c0_i32, %arg0 : i32, i32
  }
  func.func @transform_1(%arg0: i32) -> (i32, i32) {
    %c0_i32 = arith.constant 0 : i32
    %c0_i32_0 = arith.constant 0 : i32
    return %c0_i32, %arg0 : i32, i32
  }
  func.func @transform_2(%arg0: i32) -> (i32, i32) {
    %c0_i32 = arith.constant 0 : i32
    %c0_i32_0 = arith.constant 0 : i32
    %c0_i32_1 = arith.constant 0 : i32
    return %c0_i32, %c0_i32_0 : i32, i32
  }
}

module attributes {stable_mosaic.version = 11 : i64} {
  func.func @_sqdiff_partial_kernel(%arg0: i32, %arg1: memref<8x256xf32, #tpu.memory_space<vmem>>, %arg2: memref<8x256xf32, #tpu.memory_space<vmem>>, %arg3: memref<1x1xf32, #tpu.memory_space<smem>>) attributes {dimension_semantics = [#tpu.dimension_semantics<parallel>], iteration_bounds = array<i64: 1>, scalar_prefetch = 0 : i64, scratch_operands = 0 : i64, tpu.core_type = #tpu.core_type<tc>, window_params = [{transform_indices = @transform_0, window_bounds = array<i64: 8, 256>}, {transform_indices = @transform_1, window_bounds = array<i64: 8, 256>}, {transform_indices = @transform_2, window_bounds = array<i64: 1, 1>}]} {
    %c0 = arith.constant 0 : index
    %c0_0 = arith.constant 0 : index
    %0 = vector.load %arg1[%c0, %c0_0] : memref<8x256xf32, #tpu.memory_space<vmem>>, vector<8x256xf32>
    %c0_1 = arith.constant 0 : index
    %c0_2 = arith.constant 0 : index
    %1 = vector.load %arg2[%c0_1, %c0_2] : memref<8x256xf32, #tpu.memory_space<vmem>>, vector<8x256xf32>
    %2 = arith.subf %0, %1 : vector<8x256xf32>
    %3 = arith.mulf %2, %2 : vector<8x256xf32>
    %4 = vector.shape_cast %3 : vector<8x256xf32> to vector<1x8x256xf32>
    %cst = arith.constant dense<0.000000e+00> : vector<1xf32>
    %5 = vector.multi_reduction <add>, %4, %cst [1, 2] : vector<1x8x256xf32> to vector<1xf32>
    %6 = vector.shape_cast %5 : vector<1xf32> to vector<1x1x1xf32>
    %7 = vector.extract %6[0, 0, 0] : f32 from vector<1x1x1xf32>
    %c0_3 = arith.constant 0 : index
    %c0_4 = arith.constant 0 : index
    %8 = memref.load %arg3[%c0_3, %c0_4] : memref<1x1xf32, #tpu.memory_space<smem>>
    memref.store %7, %arg3[%c0_3, %c0_4] : memref<1x1xf32, #tpu.memory_space<smem>>
    return
  }
  func.func @transform_0(%arg0: i32) -> (i32, i32) {
    %c0_i32 = arith.constant 0 : i32
    %c0_i32_0 = arith.constant 0 : i32
    return %arg0, %c0_i32 : i32, i32
  }
  func.func @transform_1(%arg0: i32) -> (i32, i32) {
    %c0_i32 = arith.constant 0 : i32
    %c0_i32_0 = arith.constant 0 : i32
    return %arg0, %c0_i32 : i32, i32
  }
  func.func @transform_2(%arg0: i32) -> (i32, i32) {
    %c0_i32 = arith.constant 0 : i32
    %c0_i32_0 = arith.constant 0 : i32
    return %arg0, %c0_i32 : i32, i32
  }
}

module attributes {stable_mosaic.version = 11 : i64} {
  func.func @_gram_mse_kernel(%arg0: i32, %arg1: memref<16x64xf32, #tpu.memory_space<vmem>>, %arg2: memref<16x64xf32, #tpu.memory_space<vmem>>, %arg3: memref<1x1xf32, #tpu.memory_space<smem>>, %arg4: memref<16x16xf32, #tpu.memory_space<vmem>>, %arg5: memref<16x16xf32, #tpu.memory_space<vmem>>) attributes {dimension_semantics = [#tpu.dimension_semantics<arbitrary>], iteration_bounds = array<i64: 1>, scalar_prefetch = 0 : i64, scratch_operands = 2 : i64, tpu.core_type = #tpu.core_type<tc>, window_params = [{transform_indices = @transform_0, window_bounds = array<i64: 16, 64>}, {transform_indices = @transform_1, window_bounds = array<i64: 16, 64>}, {transform_indices = @transform_2, window_bounds = array<i64: 1, 1>}]} {
    %c0_i32 = arith.constant 0 : i32
    %0 = arith.cmpi eq, %arg0, %c0_i32 : i32
    %1 = arith.extui %0 : i1 to i32
    %c0_i32_0 = arith.constant 0 : i32
    %2 = arith.cmpi ne, %1, %c0_i32_0 : i32
    scf.if %2 {
      %cst_15 = arith.constant 0.000000e+00 : f32
      %16 = vector.broadcast %cst_15 : f32 to vector<16x16xf32>
      %c0_16 = arith.constant 0 : index
      %c0_17 = arith.constant 0 : index
      %17 = vector.load %arg4[%c0_16, %c0_17] : memref<16x16xf32, #tpu.memory_space<vmem>>, vector<16x16xf32>
      tpu.vector_store %arg4[%c0_16, %c0_17], %16 {strides = array<i32>} : memref<16x16xf32, #tpu.memory_space<vmem>>, vector<16x16xf32>,
      %cst_18 = arith.constant 0.000000e+00 : f32
      %18 = vector.broadcast %cst_18 : f32 to vector<16x16xf32>
      %c0_19 = arith.constant 0 : index
      %c0_20 = arith.constant 0 : index
      %19 = vector.load %arg5[%c0_19, %c0_20] : memref<16x16xf32, #tpu.memory_space<vmem>>, vector<16x16xf32>
      tpu.vector_store %arg5[%c0_19, %c0_20], %18 {strides = array<i32>} : memref<16x16xf32, #tpu.memory_space<vmem>>, vector<16x16xf32>,
    } else {
    }
    %c0 = arith.constant 0 : index
    %c0_1 = arith.constant 0 : index
    %3 = vector.load %arg1[%c0, %c0_1] : memref<16x64xf32, #tpu.memory_space<vmem>>, vector<16x64xf32>
    %c0_2 = arith.constant 0 : index
    %c0_3 = arith.constant 0 : index
    %4 = vector.load %arg2[%c0_2, %c0_3] : memref<16x64xf32, #tpu.memory_space<vmem>>, vector<16x64xf32>
    %c0_4 = arith.constant 0 : index
    %c0_5 = arith.constant 0 : index
    %5 = vector.load %arg4[%c0_4, %c0_5] : memref<16x16xf32, #tpu.memory_space<vmem>>, vector<16x16xf32>
    %cst = arith.constant dense<0.000000e+00> : vector<16x16xf32>
    %6 = tpu.matmul %3, %3, %cst {dimension_numbers = #tpu.dot_dimension_numbers<[1], [1], [0], [0], [0, 0, 1, 0], [], []>} : vector<16x64xf32>, vector<16x64xf32>, vector<16x16xf32> -> vector<16x16xf32>
    %7 = arith.addf %5, %6 : vector<16x16xf32>
    %c0_6 = arith.constant 0 : index
    %c0_7 = arith.constant 0 : index
    %8 = vector.load %arg4[%c0_6, %c0_7] : memref<16x16xf32, #tpu.memory_space<vmem>>, vector<16x16xf32>
    tpu.vector_store %arg4[%c0_6, %c0_7], %7 {strides = array<i32>} : memref<16x16xf32, #tpu.memory_space<vmem>>, vector<16x16xf32>,
    %c0_8 = arith.constant 0 : index
    %c0_9 = arith.constant 0 : index
    %9 = vector.load %arg5[%c0_8, %c0_9] : memref<16x16xf32, #tpu.memory_space<vmem>>, vector<16x16xf32>
    %cst_10 = arith.constant dense<0.000000e+00> : vector<16x16xf32>
    %10 = tpu.matmul %4, %4, %cst_10 {dimension_numbers = #tpu.dot_dimension_numbers<[1], [1], [0], [0], [0, 0, 1, 0], [], []>} : vector<16x64xf32>, vector<16x64xf32>, vector<16x16xf32> -> vector<16x16xf32>
    %11 = arith.addf %9, %10 : vector<16x16xf32>
    %c0_11 = arith.constant 0 : index
    %c0_12 = arith.constant 0 : index
    %12 = vector.load %arg5[%c0_11, %c0_12] : memref<16x16xf32, #tpu.memory_space<vmem>>, vector<16x16xf32>
    tpu.vector_store %arg5[%c0_11, %c0_12], %11 {strides = array<i32>} : memref<16x16xf32, #tpu.memory_space<vmem>>, vector<16x16xf32>,
    %c0_i32_13 = arith.constant 0 : i32
    %13 = arith.cmpi eq, %arg0, %c0_i32_13 : i32
    %14 = arith.extui %13 : i1 to i32
    %c0_i32_14 = arith.constant 0 : i32
    %15 = arith.cmpi ne, %14, %c0_i32_14 : i32
    scf.if %15 {
      %c0_15 = arith.constant 0 : index
      %c0_16 = arith.constant 0 : index
      %16 = vector.load %arg4[%c0_15, %c0_16] : memref<16x16xf32, #tpu.memory_space<vmem>>, vector<16x16xf32>
      %c0_17 = arith.constant 0 : index
      %c0_18 = arith.constant 0 : index
      %17 = vector.load %arg5[%c0_17, %c0_18] : memref<16x16xf32, #tpu.memory_space<vmem>>, vector<16x16xf32>
      %18 = arith.subf %16, %17 : vector<16x16xf32>
      %cst_19 = arith.constant 9.765625E-4 : f32
      %19 = vector.broadcast %cst_19 : f32 to vector<16x16xf32>
      %20 = arith.mulf %18, %19 : vector<16x16xf32>
      %21 = arith.mulf %20, %20 : vector<16x16xf32>
      %22 = vector.shape_cast %21 : vector<16x16xf32> to vector<1x16x16xf32>
      %cst_20 = arith.constant dense<0.000000e+00> : vector<1xf32>
      %23 = vector.multi_reduction <add>, %22, %cst_20 [1, 2] : vector<1x16x16xf32> to vector<1xf32>
      %24 = vector.shape_cast %23 : vector<1xf32> to vector<1x1x1xf32>
      %25 = vector.extract %24[0, 0, 0] : f32 from vector<1x1x1xf32>
      %c0_21 = arith.constant 0 : index
      %c0_22 = arith.constant 0 : index
      %26 = memref.load %arg3[%c0_21, %c0_22] : memref<1x1xf32, #tpu.memory_space<smem>>
      memref.store %25, %arg3[%c0_21, %c0_22] : memref<1x1xf32, #tpu.memory_space<smem>>
    } else {
    }
    return
  }
  func.func @transform_0(%arg0: i32) -> (i32, i32) {
    %c0_i32 = arith.constant 0 : i32
    %c0_i32_0 = arith.constant 0 : i32
    return %c0_i32, %arg0 : i32, i32
  }
  func.func @transform_1(%arg0: i32) -> (i32, i32) {
    %c0_i32 = arith.constant 0 : i32
    %c0_i32_0 = arith.constant 0 : i32
    return %c0_i32, %arg0 : i32, i32
  }
  func.func @transform_2(%arg0: i32) -> (i32, i32) {
    %c0_i32 = arith.constant 0 : i32
    %c0_i32_0 = arith.constant 0 : i32
    %c0_i32_1 = arith.constant 0 : i32
    return %c0_i32, %c0_i32_0 : i32, i32
  }
}

</mosaic_0001>

<bundles_post_ra>
// kernel: _forward.3
= control target key start
LH: loop header
LB: loop body
LE: loop exit
PB: predicated region body
PF: predicated region fallthrough
CT: control target
= control target key end

     0   :  { %s89_s0 = inlined_call_operand.vmem [shape: f32[8,256], index: 0, kind: input, shape index: {}]   ;;  %s90_s1 = inlined_call_operand.vmem [shape: f32[8,256], index: 1, kind: input, shape index: {}]   ;;  %s91_s2 = inlined_call_operand.hbm [shape: f32[1,1], index: 2, kind: output, shape index: {}]  }
   0x1   :  { %v12_v0 = vld [vmem:[%s89_s0] sm:$0xff]  ;;  %v13_v1 = vld [vmem:[%s89_s0 + $0x8] sm:$0xff] }
   0x2   :  { %v14_v2 = vld [vmem:[%s90_s1] sm:$0xff]  ;;  %v15_v3 = vld [vmem:[%s90_s1 + $0x8] sm:$0xff] }
   0x3   :  { %v16_v4 = vsub.f32 %v12_v0, %v14_v2 }
   0x4   :  { %7 = vsyncpa [#allocation3], 0  ;;  %v17_v5 = vsub.f32 %v13_v1, %v15_v3  ;;  %s58_s17 = smov [#allocation2]  }
   0x5   :  { %v18_v6 = vmul.f32 %v16_v4, %v16_v4 }
   0x6   :  { %v19_v7 = vmul.f32 %v17_v5, %v17_v5 }
   0x8   :  { %v20_v8 = vadd.f32 %v19_v7, %v18_v6 }
   0xa   :  { %21 = vadd.xlane.f32.xlu0 %v20_v8 }
  0x93   :  { %v22_v9 = vpop.xlane.xlu0 %21 }
  0x94   :  { %v23_v10 = vrot.slane %v22_v9, 4 }
  0x96   :  { %v24_v11 = vadd.f32 %v23_v10, %v22_v9 }
  0x98   :  { %v25_v12 = vrot.slane %v24_v11, 2 }
  0x9a   :  { %v26_v13 = vadd.f32 %v25_v12, %v24_v11 }
  0x9c   :  { %v27_v14 = vrot.slane %v26_v13, 1 }
  0x9e   :  { %v28_v15 = vadd.f32 %v27_v14, %v26_v13 }
  0xa0   :  { %45 = vpush %v28_v15 }
  0xd1   :  { %s46_s0 = spop %45 }
  0xd2   :  { %31 = sst [smem:[#allocation2]] %s46_s0 }
  0xd3   :  { %39 = dma.smem_to_hbm %s58_s17, 16, %s91_s2, [#allocation3]  }
  0xd4   :  { %56 = dma.done.wait [#allocation3], 16  }
  0xd5   :  { %57 = vsyncadd [#allocation3], 4294967280 }
  0xd6   :  { %43 = sfence }
  0xd7   :  { %44 = vsyncpa [#allocation3], 1 }

// kernel: _forward.4
= control target key start
LH: loop header
LB: loop body
LE: loop exit
PB: predicated region body
PF: predicated region fallthrough
CT: control target
= control target key end

     0   :  { %vm16_vm0 = vcmask 64512   ;;  %v217_v4 = vmov 0.0   ;;  %s254_s0 = inlined_call_operand.vmem [shape: f32[8,256], index: 0, kind: input, shape index: {}]   ;;  %s255_s1 = inlined_call_operand.vmem [shape: f32[8,256], index: 1, kind: input, shape index: {}]   ;;  %s256_s2 = inlined_call_operand.hbm [shape: f32[1,1], index: 2, kind: output, shape index: {}]  }
   0x1   :  { %v20_v0 = vld [vmem:[%s254_s0 + $0x8] sm:$0xff]  ;;  %v19_v2 = vld [vmem:[%s254_s0] sm:$0xff]  ;;  %17 = vst.msk [vmem:[#allocation2] sm:$0xff] %vm16_vm0, %v217_v4  ;;  %18 = vst.msk [vmem:[#allocation3] sm:$0xff] %vm16_vm0, %v217_v4 }
   0x2   :  { %v22_v1 = vld [vmem:[%s255_s1 + $0x8] sm:$0xff]  ;;  %54 = vmatprep.subr.mxu0 %v20_v0  ;;  %v21_v3 = vld [vmem:[%s255_s1] sm:$0xff] }
   0x3   :  { %128 = vmatprep.subr.mxu1 %v22_v1 }
   0x4   :  { %7 = vsyncpa [#allocation5], 0  ;;  %55 = vmatpush1.xpose.msra.mxu0 %v19_v2  ;;  %129 = vmatpush1.xpose.msra.mxu1 %v21_v3  ;;  %s218_s1 = smov [#allocation4]  }
   0x5   :  { %88 = vmatprep.mubr.f32.mxu0 %v20_v0  ;;  %162 = vmatprep.mubr.f32.mxu1 %v22_v1 }
   0x7   :  { %89 = vmatmul.mubr.f32.vlgmr.msra.gmra.mxu0 %v19_v2  ;;  %163 = vmatmul.mubr.f32.vlgmr.msra.gmra.mxu1 %v21_v3 }
   0x8   :  { %v23_v5 = vld [vmem:[#allocation2] sm:$0xff]  ;;  %v97_v6 = vld [vmem:[#allocation3] sm:$0xff] }
  0xc7   :  { %v90_v7 = vpop.f32.mrf.mxu0  ;;  %v164_v8 = vpop.f32.mrf.mxu1 }
  0xc8   :  { %v94_v9 = vadd.f32 %v90_v7, %v23_v5  ;;  %v168_v10 = vadd.f32 %v164_v8, %v97_v6 }
  0xc9   :  { %v92_v11 = vpop.f32.mrf.mxu0  ;;  %v166_v12 = vpop.f32.mrf.mxu1 }
  0xca   :  { %96 = vst.msk [vmem:[#allocation2] sm:$0xff] %vm16_vm0, %v94_v9  ;;  %169 = vst.msk [vmem:[#allocation3] sm:$0xff] %vm16_vm0, %v168_v10 }
  0xd1   :  { %v173_v13 = vld [vmem:[#allocation2] sm:$0xff]  ;;  %v174_v14 = vld [vmem:[#allocation3] sm:$0xff] }
  0xd2   :  { %v175_v15 = vsub.f32 %v173_v13, %v174_v14 }
  0xd4   :  { %v176_v16 = vmul.f32 0.00048828125, %v175_v15 }
  0xd6   :  { %v177_v17 = vmul.f32 %v176_v16, %v176_v16 }
  0xd8   :  { %v178_v18 = vsel %vm16_vm0, %v177_v17, 0.0 }
  0xd9   :  { %179 = vadd.xlane.f32.xlu0 %v178_v18 }
 0x162   :  { %v180_v19 = vpop.xlane.xlu0 %179 }
 0x163   :  { %v181_v20 = vrot.slane %v180_v19, 4 }
 0x165   :  { %v182_v21 = vadd.f32 %v181_v20, %v180_v19 }
 0x167   :  { %v183_v22 = vrot.slane %v182_v21, 2 }
 0x169   :  { %v184_v23 = vadd.f32 %v183_v22, %v182_v21 }
 0x16b   :  { %v185_v24 = vrot.slane %v184_v23, 1 }
 0x16d   :  { %v186_v25 = vadd.f32 %v185_v24, %v184_v23 }
 0x16f   :  { %203 = vpush %v186_v25 }
 0x1a0   :  { %s204_s0 = spop %203 }
 0x1a1   :  { %189 = sst [smem:[#allocation4]] %s204_s0 }
 0x1a2   :  { %197 = dma.smem_to_hbm %s218_s1, 16, %s256_s2, [#allocation5]  }
 0x1a3   :  { %215 = dma.done.wait [#allocation5], 16  }
 0x1a4   :  { %216 = vsyncadd [#allocation5], 4294967280 }
 0x1a5   :  { %201 = sfence }
 0x1a6   :  { %202 = vsyncpa [#allocation5], 1 }

// kernel: _forward.5
= control target key start
LH: loop header
LB: loop body
LE: loop exit
PB: predicated region body
PF: predicated region fallthrough
CT: control target
= control target key end

     0   :  { %vm27_vm0 = vcmask 523264   ;;  %vm16_vm1 = vcmask 130048   ;;  %v285_v4 = vmov 0.0   ;;  %s339_s0 = inlined_call_operand.vmem [shape: f32[16,64], index: 0, kind: input, shape index: {}]   ;;  %s340_s1 = inlined_call_operand.vmem [shape: f32[16,64], index: 1, kind: input, shape index: {}]   ;;  %s341_s2 = inlined_call_operand.hbm [shape: f32[1,1], index: 2, kind: output, shape index: {}]  }
   0x1   :  { %v22_v0 = vld [vmem:[%s339_s0 + $0x8] sm:$0xff]  ;;  %v21_v2 = vld [vmem:[%s339_s0] sm:$0xff]  ;;  %18 = vst.msk [vmem:[#allocation2 + $0x8] sm:$0xff] %vm16_vm1, %v285_v4  ;;  %17 = vst.msk [vmem:[#allocation2] sm:$0xff] %vm16_vm1, %v285_v4 }
   0x2   :  { %v24_v1 = vld [vmem:[%s340_s1 + $0x8] sm:$0xff]  ;;  %257 = vmatprep.subr.msk.mxu0 %vm27_vm0, %v22_v0  ;;  %v23_v3 = vld [vmem:[%s340_s1] sm:$0xff]  ;;  %19 = vst.msk [vmem:[#allocation3] sm:$0xff] %vm16_vm1, %v285_v4  ;;  %20 = vst.msk [vmem:[#allocation3 + $0x8] sm:$0xff] %vm16_vm1, %v285_v4 }
   0x3   :  { %264 = vmatprep.subr.msk.mxu1 %vm27_vm0, %v24_v1 }
   0x4   :  { %7 = vsyncpa [#allocation5], 0  ;;  %258 = vmatpush3.xpose.msk.msra.mxu0 %vm27_vm0, %v22_v0  ;;  %265 = vmatpush3.xpose.msk.msra.mxu1 %vm27_vm0, %v24_v1  ;;  %s286_s1 = smov [#allocation4]  }
   0x5   :  { %259 = vmatprep.subr.msk.mxu0 %vm27_vm0, %v21_v2  ;;  %266 = vmatprep.subr.msk.mxu1 %vm27_vm0, %v23_v3 }
   0x6   :  { %261 = vmatprep.mubr.msk.f32.mxu0 %vm27_vm0, %v21_v2  ;;  %268 = vmatprep.mubr.msk.f32.mxu1 %vm27_vm0, %v23_v3 }
   0x8   :  { %260 = vmatpush3.xpose.msk.msra.mxu0 %vm27_vm0, %v21_v2  ;;  %267 = vmatpush3.xpose.msk.msra.mxu1 %vm27_vm0, %v23_v3  ;;  %v26_v5 = vld [vmem:[#allocation2 + $0x8] sm:$0xff]  ;;  %v25_v9 = vld [vmem:[#allocation2] sm:$0xff] }
   0x9   :  { %v115_v6 = vld [vmem:[#allocation3 + $0x8] sm:$0xff]  ;;  %v114_v10 = vld [vmem:[#allocation3] sm:$0xff] }
   0xb   :  { %262 = vmatmul.mubr.msk.f32.vlgmr.msra.gmra.mxu0 %vm27_vm0, %v22_v0  ;;  %269 = vmatmul.mubr.msk.f32.vlgmr.msra.gmra.mxu1 %vm27_vm0, %v24_v1 }
  0xcb   :  { %v263_v7 = vpop.f32.mrf.mxu0  ;;  %v270_v8 = vpop.f32.mrf.mxu1 }
  0xcc   :  { %v110_v11 = vadd.f32 %v263_v7, %v26_v5  ;;  %v198_v12 = vadd.f32 %v270_v8, %v115_v6 }
  0xcd   :  { %v100_v13 = vpop.f32.mrf.mxu0  ;;  %v188_v14 = vpop.f32.mrf.mxu1 }
  0xce   :  { %113 = vst.msk [vmem:[#allocation2 + $0x8] sm:$0xff] %vm16_vm1, %v110_v11  ;;  %200 = vst.msk [vmem:[#allocation3 + $0x8] sm:$0xff] %vm16_vm1, %v198_v12  ;;  %v109_v15 = vadd.f32 %v100_v13, %v25_v9  ;;  %v197_v16 = vadd.f32 %v188_v14, %v114_v10 }
  0xd0   :  { %112 = vst.msk [vmem:[#allocation2] sm:$0xff] %vm16_vm1, %v109_v15  ;;  %199 = vst.msk [vmem:[#allocation3] sm:$0xff] %vm16_vm1, %v197_v16 }
  0xd5   :  { %v205_v17 = vld [vmem:[#allocation2 + $0x8] sm:$0xff]  ;;  %v207_v18 = vld [vmem:[#allocation3 + $0x8] sm:$0xff] }
  0xd6   :  { %v209_v19 = vsub.f32 %v205_v17, %v207_v18 }
  0xd7   :  { %v204_v20 = vld [vmem:[#allocation2] sm:$0xff]  ;;  %v206_v21 = vld [vmem:[#allocation3] sm:$0xff] }
  0xd8   :  { %v208_v22 = vsub.f32 %v204_v20, %v206_v21  ;;  %v211_v23 = vmul.f32 0.0009765625, %v209_v19 }
  0xda   :  { %v210_v24 = vmul.f32 0.0009765625, %v208_v22  ;;  %v213_v25 = vmul.f32 %v211_v23, %v211_v23 }
  0xdc   :  { %v212_v26 = vmul.f32 %v210_v24, %v210_v24  ;;  %v215_v28 = vsel %vm16_vm1, %v213_v25, 0.0 }
  0xde   :  { %v214_v27 = vsel %vm16_vm1, %v212_v26, 0.0 }
  0xdf   :  { %v216_v29 = vadd.f32 %v215_v28, %v214_v27 }
  0xe1   :  { %217 = vadd.xlane.f32.xlu0 %v216_v29 }
 0x16a   :  { %v218_v30 = vpop.xlane.xlu0 %217 }
 0x16b   :  { %v219_v31 = vrot.slane %v218_v30, 4 }
 0x16d   :  { %v220_v32 = vadd.f32 %v219_v31, %v218_v30 }
 0x16f   :  { %v221_v33 = vrot.slane %v220_v32, 2 }
 0x171   :  { %v222_v34 = vadd.f32 %v221_v33, %v220_v32 }
 0x173   :  { %v223_v35 = vrot.slane %v222_v34, 1 }
 0x175   :  { %v224_v36 = vadd.f32 %v223_v35, %v222_v34 }
 0x177   :  { %271 = vpush %v224_v36 }
 0x1a8   :  { %s272_s0 = spop %271 }
 0x1a9   :  { %227 = sst [smem:[#allocation4]] %s272_s0 }
 0x1aa   :  { %235 = dma.smem_to_hbm %s286_s1, 16, %s341_s2, [#allocation5]  }
 0x1ab   :  { %283 = dma.done.wait [#allocation5], 16  }
 0x1ac   :  { %284 = vsyncadd [#allocation5], 4294967280 }
 0x1ad   :  { %239 = sfence }
 0x1ae   :  { %240 = vsyncpa [#allocation5], 1 }

</bundles_post_ra>
